<compile_context>
chip_gen: v7x
topology: tpu7x:2x2x1
jax: 0.10.0
libtpu: 0.0.40
codegen_flags: <defaults>
</compile_context>

<pallas_src>
import functools
import math

import jax
import jax.numpy as jnp
from jax.experimental import pallas as pl
from jax.experimental.pallas import tpu as pltpu


def _rmsnorm_kernel(scale_ref, x_ref, o_ref, *, eps):
    # scale_ref: (1, D)   x_ref / o_ref: (tile_rows, D)
    x = x_ref[...].astype(jnp.float32)
    # Per-row sum of squares (cross-lane reduce -> XLU).
    ss = jnp.sum(x * x, axis=-1, keepdims=True)             # (tile_rows, 1)
    # 1 / (||x|| + eps): EUP reciprocal (approx) keeps the VALU slots free.
    inv = pl.reciprocal(jnp.sqrt(ss) + eps, approx=True)    # (tile_rows, 1)
    scale = scale_ref[...].astype(jnp.float32)               # (1, D)
    o_ref[...] = (x * (inv * scale)).astype(o_ref.dtype)


def rmsnorm(x, scale, eps=1e-6):
    """RMSNorm (L2-norm form) over the last dim of x (*prefix, D); scale: (D,)."""
    *prefix, D = x.shape
    assert scale.shape[-1] == D

    rows = math.prod(prefix) if prefix else 1
    if rows == 0:
        return x  # degenerate empty input

    xr = x.reshape(rows, D)
    scale_row = scale.reshape(1, D)

    # --- Row-tile selection -------------------------------------------------
    # VMEM footprint accounting uses the lane-padded feature dim (last dim is
    # padded to a multiple of 128 lanes in VMEM).
    itemsize = jnp.dtype(x.dtype).itemsize
    lane_padded_d = ((D + 127) // 128) * 128
    bytes_per_row_vmem = lane_padded_d * itemsize

    # Target ~4 MiB per input block: double-buffered in+out => ~16 MiB VMEM,
    # well under the explicit 48 MiB limit below (and v7x's 64 MiB physical).
    target_rows = max(8, (4 << 20) // max(1, bytes_per_row_vmem))

    # v7x megacore guard: keep >= 4 grid steps whenever rows allow, so the
    # "parallel" grid axis can shard across both TensorCores.
    min_grid = 4
    if rows >= min_grid * 8:
        target_rows = min(target_rows, rows // min_grid)

    if rows <= 8:
        tile = rows  # block == full array dim is always legal
    else:
        tile = max(8, (min(rows, target_rows) // 8) * 8)

    # Ragged last block handled by Pallas (no jnp.pad copy, no output slice).
    grid = pl.cdiv(rows, tile)

    out = pl.pallas_call(
        functools.partial(_rmsnorm_kernel, eps=float(eps)),
        out_shape=jax.ShapeDtypeStruct((rows, D), x.dtype),
        grid_spec=pltpu.PrefetchScalarGridSpec(
            num_scalar_prefetch=0,
            grid=(grid,),
            in_specs=[
                pl.BlockSpec((1, D), lambda i: (0, 0)),      # scale (reused)
                pl.BlockSpec((tile, D), lambda i: (i, 0)),   # x row tile
            ],
            out_specs=pl.BlockSpec((tile, D), lambda i: (i, 0)),
        ),
        compiler_params=pltpu.CompilerParams(
            dimension_semantics=("parallel",),
            vmem_limit_bytes=48 << 20,
        ),
    )(scale_row, xr)

    return out.reshape(*prefix, D)


def _rmsnorm_reference(x, scale, eps=1e-6):
    """Pure-JAX reference mirroring the PyTorch forward exactly."""
    norm = jnp.linalg.norm(x, axis=-1, keepdims=True)
    return x * (scale / (norm + eps))


if __name__ == "__main__":
    key = jax.random.PRNGKey(0)
    B, T, D = 2, 8, 32  # batch, seq, hidden
    kx, ks = jax.random.split(key)
    x = jax.random.normal(kx, (B, T, D), dtype=jnp.float32)
    eps = 1e-6

    # Tolerance loosened to 2e-3 because the kernel uses the EUP approximate
    # reciprocal (per perf feedback); still far tighter than bf16 precision.
    TOL = 2e-3

    # Module init: scale = ones(dim)
    scale = jnp.ones((D,), dtype=jnp.float32)
    out = jax.block_until_ready(rmsnorm(x, scale, eps))
    ref = _rmsnorm_reference(x, scale, eps)
    assert out.shape == x.shape and out.dtype == x.dtype
    assert jnp.allclose(out, ref, atol=TOL, rtol=TOL), "mismatch vs reference"

    # Also exercise a non-trivial (trained) scale.
    scale2 = jax.random.normal(ks, (D,), dtype=jnp.float32)
    out2 = jax.block_until_ready(rmsnorm(x, scale2, eps))
    ref2 = _rmsnorm_reference(x, scale2, eps)
    assert jnp.allclose(out2, ref2, atol=TOL, rtol=TOL), "mismatch (scaled)"

    print("KERNEL_OK")
</pallas_src>

<mosaic_0001>
module attributes {stable_mosaic.version = 11 : i64} {
  func.func @_rmsnorm_kernel(%arg0: i32, %arg1: memref<1x32xf32, #tpu.memory_space<vmem>>, %arg2: memref<16x32xf32, #tpu.memory_space<vmem>>, %arg3: memref<16x32xf32, #tpu.memory_space<vmem>>) attributes {dimension_semantics = [#tpu.dimension_semantics<parallel>], iteration_bounds = array<i64: 1>, scalar_prefetch = 0 : i64, scratch_operands = 0 : i64, tpu.core_type = #tpu.core_type<tc>, window_params = [{pipeline_mode = #tpu.pipeline_mode<synchronous>, transform_indices = @transform_0, window_bounds = array<i64: 1, 32>}, {transform_indices = @transform_1, window_bounds = array<i64: 16, 32>}, {transform_indices = @transform_2, window_bounds = array<i64: 16, 32>}]} {
    %c0 = arith.constant 0 : index
    %c0_0 = arith.constant 0 : index
    %0 = vector.load %arg2[%c0, %c0_0] : memref<16x32xf32, #tpu.memory_space<vmem>>, vector<16x32xf32>
    %1 = arith.mulf %0, %0 : vector<16x32xf32>
    %cst = arith.constant dense<0.000000e+00> : vector<16xf32>
    %2 = vector.multi_reduction <add>, %1, %cst [1] : vector<16x32xf32> to vector<16xf32>
    %3 = vector.shape_cast %2 : vector<16xf32> to vector<16x1xf32>
    %4 = math.sqrt %3 : vector<16x1xf32>
    %cst_1 = arith.constant 9.99999997E-7 : f32
    %5 = vector.broadcast %cst_1 : f32 to vector<16x1xf32>
    %6 = arith.addf %4, %5 : vector<16x1xf32>
    %7 = tpu.reciprocal %6 {approx = true} : vector<16x1xf32> -> vector<16x1xf32>
    %c0_2 = arith.constant 0 : index
    %c0_3 = arith.constant 0 : index
    %8 = vector.load %arg1[%c0_2, %c0_3] : memref<1x32xf32, #tpu.memory_space<vmem>>, vector<1x32xf32>
    %9 = vector.broadcast %7 : vector<16x1xf32> to vector<16x32xf32>
    %10 = vector.broadcast %8 : vector<1x32xf32> to vector<16x32xf32>
    %11 = arith.mulf %9, %10 : vector<16x32xf32>
    %12 = arith.mulf %0, %11 : vector<16x32xf32>
    %c0_4 = arith.constant 0 : index
    %c0_5 = arith.constant 0 : index
    %13 = vector.load %arg3[%c0_4, %c0_5] : memref<16x32xf32, #tpu.memory_space<vmem>>, vector<16x32xf32>
    tpu.vector_store %arg3[%c0_4, %c0_5], %12 {strides = array<i32>} : memref<16x32xf32, #tpu.memory_space<vmem>>, vector<16x32xf32>,
    return
  }
  func.func @transform_0(%arg0: i32) -> (i32, i32) {
    %c0_i32 = arith.constant 0 : i32
    %c0_i32_0 = arith.constant 0 : i32
    %c0_i32_1 = arith.constant 0 : i32
    return %c0_i32, %c0_i32_0 : i32, i32
  }
  func.func @transform_1(%arg0: i32) -> (i32, i32) {
    %c0_i32 = arith.constant 0 : i32
    %c0_i32_0 = arith.constant 0 : i32
    return %arg0, %c0_i32 : i32, i32
  }
  func.func @transform_2(%arg0: i32) -> (i32, i32) {
    %c0_i32 = arith.constant 0 : i32
    %c0_i32_0 = arith.constant 0 : i32
    return %arg0, %c0_i32 : i32, i32
  }
}

</mosaic_0001>

<bundles_post_ra>
// kernel: tpu_custom_call.1
= control target key start
LH: loop header
LB: loop body
LE: loop exit
PB: predicated region body
PF: predicated region fallthrough
CT: control target
= control target key end

     0   :  { %7 = vsyncpa [#allocation3], 0  ;;  %s257_s0 = inlined_call_operand.hbm [shape: f32[1,32], index: 0, kind: input, shape index: {}]   ;;  %s258_s1 = inlined_call_operand.hbm [shape: f32[16,32], index: 1, kind: input, shape index: {}]   ;;  %s259_s2 = inlined_call_operand.hbm [shape: f32[16,32], index: 2, kind: output, shape index: {}]  }
   0x1   :  { %8 = vsyncpa [#allocation6], 0 }
   0x2   :  { %9 = vsyncpa [#allocation4], 0  ;;  %s184_s9 = smov [#allocation2]   ;;  %s185_s11 = smov [#allocation5]  }
   0x3   :  { %s16_s10 = sshll.u32 %s184_s9, 4  ;;  %s25_s12 = sshll.u32 %s185_s11, 4  ;;  %s17_s10 = int_to_ptr.vmem [resolvable:$true] %s16_s10  ;;  %s204_s12 = int_to_ptr.vmem [resolvable:$true] %s25_s12 }
   0x4   :  { %s112_s15 = scalar_lea.hbm %s257_s0, 16 }
   0x5   :  { %p113_p0 = scmp.ne.s32.totalorder %s257_s0, %s112_s15  ;;  %p116_p1 = scmp.lt.u32.totalorder %s112_s15, %s257_s0 }
   0x7   :  { %p118_p2 = pnand %p116_p1, %p113_p0 }
   0x9   :  { %121 = shalt.err (!%p118_p2)
}
   0xa   :  { %s122_s20 = scalar_lea.vmem %s17_s10, 16  ;;  %s126_s21 = scalar_lea.vmem %s17_s10, 32 }
   0xb   :  { %p123_p3 = scmp.ne.s32.totalorder %s17_s10, %s122_s20  ;;  %p127_p4 = scmp.lt.s32.totalorder %s17_s10, %s17_s10 }
   0xc   :  { %p128_p5 = scmp.lt.s32.totalorder %s126_s21, %s122_s20 }
   0xe   :  { %p129_p6 = por %p128_p5, %p127_p4 }
  0x10   :  { %p130_p7 = pnand %p129_p6, %p123_p3 }
  0x12   :  { %133 = shalt.err (!%p130_p7)
}
  0x13   :  { %19 = dma.hbm_to_vmem [thread:$0]  %s257_s0, 16, %s17_s10, [#allocation3]  }
  0x14   :  { %s134_s26 = scalar_lea.hbm %s258_s1, 256 }
  0x15   :  { %p135_p8 = scmp.ne.s32.totalorder %s258_s1, %s134_s26  ;;  %p138_p9 = scmp.lt.u32.totalorder %s134_s26, %s258_s1 }
  0x17   :  { %p140_p10 = pnand %p138_p9, %p135_p8 }
  0x19   :  { %143 = shalt.err (!%p140_p10)
}
  0x1a   :  { %s144_s3 = scalar_lea.vmem %s204_s12, 256  ;;  %p149_p12 = scmp.lt.s32.totalorder %s204_s12, %s204_s12 }
  0x1b   :  { %p145_p11 = scmp.ne.s32.totalorder %s204_s12, %s144_s3  ;;  %p150_p13 = scmp.lt.s32.totalorder %s144_s3, %s144_s3 }
  0x1d   :  { %p151_p0 = por %p150_p13, %p149_p12 }
  0x1f   :  { %p152_p1 = pnand %p151_p0, %p145_p11 }
  0x21   :  { %155 = shalt.err (!%p152_p1)
}
  0x22   :  { %s186_s0 = smov 128   ;;  %s187_s4 = smov 8  }
  0x23   :  { %31 = dma.hbm_to_vmem [thread:$0]  %s258_s1, 256, %s204_s12, [#allocation6], %s186_s0, %s186_s0, %s187_s4  }
  0x24   :  { %178 = dma.done.wait [#allocation3], 16  }
  0x25   :  { %179 = vsyncadd [#allocation3], 4294967280 }
  0x26   :  { %180 = dma.done.wait [#allocation6], 256  }
  0x27   :  { %181 = vsyncadd [#allocation6], 4294967040  ;;  %v38_v0 = vld [vmem:[#allocation5] sm:$0xff]  ;;  %vm42_vm0 = vcmask 261120   ;;  %v39_v1 = vld [vmem:[#allocation5 + $0x8] sm:$0xff]  ;;  %s188_s1 = smov [#allocation7]  }
  0x28   :  { %v40_v2 = vmul.f32 %v38_v0, %v38_v0  ;;  %v41_v3 = vmul.f32 %v39_v1, %v39_v1  ;;  %v98_v20 = vld [vmem:[#allocation2] ss:$0 sm:$0xff]  ;;  %s85_s7 = sshll.u32 %s188_s1, 4  ;;  %s86_s7 = int_to_ptr.vmem [resolvable:$true] %s85_s7 }
  0x29   :  { %s156_s8 = scalar_lea.vmem %s86_s7, 256  ;;  %p161_p3 = scmp.lt.s32.totalorder %s86_s7, %s86_s7 }
  0x2a   :  { %v43_v4 = vsel %vm42_vm0, %v40_v2, 0.0  ;;  %v46_v5 = vsel %vm42_vm0, %v41_v3, 0.0  ;;  %p157_p2 = scmp.ne.s32.totalorder %s86_s7, %s156_s8  ;;  %p162_p4 = scmp.lt.s32.totalorder %s156_s8, %s156_s8 }
  0x2b   :  { %44 = vadd.xlane.f32.xlu0 %v43_v4 }
  0x2c   :  { %p163_p5 = por %p162_p4, %p161_p3 }
  0x2e   :  { %p164_p6 = pnand %p163_p5, %p157_p2 }
  0x2f   :  { %47 = vadd.xlane.f32.xlu0 %v46_v5 }
  0xb8   :  { %v45_v6 = vpop.xlane.xlu0 %44 }
  0xb9   :  { %104 = vrsqrt.f32 %v45_v6  ;;  %vm51_vm1 = vcmp.eq.f32.partialorder %v45_v6, inf  ;;  %v54_v10 = vand.u32 2147483648, %v45_v6  ;;  %vm53_vm2 = vcmp.eq.f32.partialorder %v45_v6, 0.0 }
  0xbc   :  { %v48_v7 = vpop.xlane.xlu0 %47 }
  0xbd   :  { %106 = vrsqrt.f32 %v48_v7  ;;  %vm58_vm3 = vcmp.eq.f32.partialorder %v48_v7, inf  ;;  %v61_v16 = vand.u32 2147483648, %v48_v7  ;;  %vm60_vm4 = vcmp.eq.f32.partialorder %v48_v7, 0.0 }
  0xc3   :  { %v105_v8 = vpop.eup %104 }
  0xc4   :  { %v50_v9 = vmul.f32 %v105_v8, %v45_v6 }
  0xc6   :  { %v52_v11 = vsel %vm51_vm1, %v45_v6, %v50_v9 }
  0xc7   :  { %v107_v12 = vpop.eup %106  ;;  %v55_v13 = vsel %vm53_vm2, %v54_v10, %v52_v11 }
  0xc8   :  { %v63_v14 = vadd.f32 1e-06, %v55_v13  ;;  %v57_v15 = vmul.f32 %v107_v12, %v48_v7 }
  0xca   :  { %108 = vrcp.f32 %v63_v14  ;;  %v59_v17 = vsel %vm58_vm3, %v48_v7, %v57_v15 }
  0xcb   :  { %v62_v18 = vsel %vm60_vm4, %v61_v16, %v59_v17 }
  0xcc   :  { %v64_v19 = vadd.f32 1e-06, %v62_v18 }
  0xce   :  { %110 = vrcp.f32 %v64_v19 }
  0xd4   :  { %v109_v21 = vpop.eup %108 }
  0xd5   :  { %v74_v22 = vmul.f32 %v109_v21, %v98_v20 }
  0xd7   :  { %v76_v23 = vmul.f32 %v74_v22, %v38_v0 }
  0xd8   :  { %v111_v24 = vpop.eup %110 }
  0xd9   :  { %v75_v25 = vmul.f32 %v111_v24, %v98_v20  ;;  %78 = vst.msk [vmem:[#allocation7] sm:$0xff] %vm42_vm0, %v76_v23 }
  0xdb   :  { %v77_v26 = vmul.f32 %v75_v25, %v39_v1 }
  0xdd   :  { %79 = vst.msk [vmem:[#allocation7 + $0x8] sm:$0xff] %vm42_vm0, %v77_v26 }
  0xde   :  { %167 = shalt.err (!%p164_p6)
}
  0xdf   :  { %s168_s11 = scalar_lea.hbm %s259_s2, 256 }
  0xe0   :  { %p169_p7 = scmp.ne.s32.totalorder %s259_s2, %s168_s11  ;;  %p172_p8 = scmp.lt.u32.totalorder %s168_s11, %s259_s2 }
  0xe2   :  { %p174_p9 = pnand %p172_p8, %p169_p7 }
  0xe4   :  { %177 = shalt.err (!%p174_p9)
}
  0xe5   :  { %91 = dma.vmem_to_hbm [thread:$0]  %s86_s7, 256, %s259_s2, [#allocation4], %s186_s0, %s186_s0, %s187_s4  }
  0xe6   :  { %182 = dma.done.wait [#allocation4], 256  }
  0xe7   :  { %183 = vsyncadd [#allocation4], 4294967040 }
  0xe8   :  { %95 = vsyncpa [#allocation3], 1 }
  0xe9   :  { %96 = vsyncpa [#allocation6], 1 }
  0xea   :  { %97 = vsyncpa [#allocation4], 1 }

</bundles_post_ra>
